<compile_context>
chip_gen: v6e
topology: v6e:2x2x1
jax: 0.10.0
libtpu: 0.0.40
codegen_flags: <defaults>
</compile_context>

<pallas_src>
import math
import functools

import numpy as np
import jax
import jax.numpy as jnp
from jax.experimental import pallas as pl
from jax.experimental.pallas import tpu as pltpu


def make_positional_encoding_table(max_length: int, d_model: int, dtype=jnp.float32):
    """Deterministic parameter setup (matches the PyTorch __init__ buffer `pe`)."""
    k = np.arange(max_length, dtype=np.float32)[:, None]                      # (L, 1)
    div_term = np.exp(np.arange(0, d_model, 2, dtype=np.float32)
                      * -(math.log(10000.0) / d_model))                       # (D/2,)
    pe = np.zeros((max_length, d_model), dtype=np.float32)
    pe[:, 0::2] = np.sin(k * div_term)
    pe[:, 1::2] = np.cos(k * div_term)
    return jnp.asarray(pe, dtype=dtype)                                       # (L, D)


# ---------------------------------------------------------------------------
# Kernels (rank-agnostic: work for (TB, TS, D) blocks and flattened (TB, TL) blocks)
# ---------------------------------------------------------------------------

def _pe_add_kernel(x_ref, pe_ref, o_ref):
    # pe block has a leading size-1 dim -> broadcasts over the batch sublanes.
    # pe is already in x.dtype (cast once in the wrapper), so no per-tile convert.
    o_ref[...] = (x_ref[...] + pe_ref[...]).astype(o_ref.dtype)


def _pe_dropout_tpu_kernel(seed_ref, x_ref, pe_ref, o_ref, *, p: float):
    y = x_ref[...] + pe_ref[...]
    # Independent random stream per grid tile: mix the grid position into the seed.
    pltpu.prng_seed(seed_ref[0], pl.program_id(0), pl.program_id(1))
    bits = pltpu.prng_random_bits(y.shape)
    if bits.dtype != jnp.uint32:          # normally already uint32; bitcast only if needed
        bits = pltpu.bitcast(bits, jnp.uint32)
    threshold = jnp.uint32(min(int(p * (1 << 32)), (1 << 32) - 1))
    keep = bits >= threshold              # keep with probability ~(1 - p)
    scale = jnp.asarray(1.0 / (1.0 - p), dtype=y.dtype)
    o_ref[...] = jnp.where(keep, y * scale, jnp.zeros_like(y)).astype(o_ref.dtype)


def _pe_dropout_mask_kernel(x_ref, pe_ref, u_ref, o_ref, *, p: float):
    # Portable dropout: uniform randoms streamed in (used only off-TPU, e.g. interpret mode).
    y = x_ref[...] + pe_ref[...]
    keep = u_ref[...] >= jnp.asarray(p, dtype=u_ref.dtype)
    scale = jnp.asarray(1.0 / (1.0 - p), dtype=y.dtype)
    o_ref[...] = jnp.where(keep, y * scale, jnp.zeros_like(y)).astype(o_ref.dtype)


# ---------------------------------------------------------------------------
# Tile sizing helpers
# ---------------------------------------------------------------------------

def _round_up(n: int, m: int) -> int:
    return ((n + m - 1) // m) * m


def _sublane_quantum(dtype) -> int:
    # Sublane packing quantum: 8 for 4-byte, 16 for 2-byte (bf16), 32 for 1-byte dtypes.
    return max(8, 32 // jnp.dtype(dtype).itemsize)


def _vmem_budget():
    """(tile_bytes_per_x_tile, vmem_limit_bytes), gated on the TPU generation.

    Worst case resident footprint is 2*(x_tile + out_tile + pe_tile) ≈ 6*tile_bytes
    (pe_tile == x_tile only when the batch-tile collapses to its minimum)."""
    cap = None
    try:
        cap = getattr(pltpu.get_tpu_info(), "vmem_capacity_bytes", None)
    except Exception:
        cap = None
    if cap is not None and cap >= 96 * 1024 * 1024:
        # v5e / v6e: 128 MiB physical VMEM -> big tiles, raised scoped limit.
        return 8 * 1024 * 1024, 64 * 1024 * 1024
    # v7x (64 MiB physical per TC) or unknown backend: stay conservative.
    return 4 * 1024 * 1024, 32 * 1024 * 1024


# ---------------------------------------------------------------------------
# Wrapper
# ---------------------------------------------------------------------------

def positional_encoding(x, pe_table, *, dropout_p: float = 0.1,
                        deterministic: bool = True, seed: int = 0, rng_key=None,
                        donate_x: bool = False):
    """x: (B, S, D); pe_table: (max_length, D).  Returns dropout(x + pe[:S])."""
    B, S, D = x.shape
    L_max, D_pe = pe_table.shape
    assert D_pe == D and L_max >= S
    p = 0.0 if deterministic else float(dropout_p)   # eval mode == identity dropout
    dtype = x.dtype
    itemsize = jnp.dtype(dtype).itemsize
    tile_bytes, vmem_limit = _vmem_budget()
    sub = _sublane_quantum(dtype)

    # Slice pe to the actual sequence length and cast to x.dtype ONCE (outside the kernel).
    pe_s = pe_table[:S].astype(dtype)                  # (S, D)

    if D % 128 == 0:
        # d_model is lane-dense: tile (batch, seq), keep full D per block.
        flat = False
        rows = max(sub, (tile_bytes // (D * itemsize)) // sub * sub)
        TS = min(rows, _round_up(S, sub))              # multiple of the sublane quantum
        S_pad = _round_up(S, TS)
        TB = max(1, min(B, tile_bytes // (TS * D * itemsize)))
        B_pad = _round_up(B, TB)
        padded = (S_pad != S) or (B_pad != B)
        x_in = jnp.pad(x, ((0, B_pad - B), (0, S_pad - S), (0, 0))) if padded else x
        pe_in = jnp.pad(pe_s, ((0, S_pad - S), (0, 0))).reshape(1, S_pad, D)
        grid = (S_pad // TS, B_pad // TB)              # batch innermost -> pe tile resident
        x_spec = pl.BlockSpec((TB, TS, D), lambda s, b, *_: (b, s, 0))
        pe_spec = pl.BlockSpec((1, TS, D), lambda s, b, *_: (0, s, 0))
        out_shape = jax.ShapeDtypeStruct((B_pad, S_pad, D), dtype)
    else:
        # Small d_model (e.g. the d_model=8 spec): flatten (seq, d_model) into the lane
        # axis so stores are dense vst instead of masked vst.msk.
        flat = True
        L = S * D
        lanes = max(128, (tile_bytes // (sub * itemsize)) // 128 * 128)
        TL = min(lanes, _round_up(L, 128))             # multiple of 128 lanes
        L_pad = _round_up(L, TL)
        tb = max(sub, (tile_bytes // (TL * itemsize)) // sub * sub)
        TB = min(tb, _round_up(B, sub))                # multiple of the sublane quantum
        B_pad = _round_up(B, TB)
        padded = (L_pad != L) or (B_pad != B)
        x_flat = x.reshape(B, L)
        x_in = jnp.pad(x_flat, ((0, B_pad - B), (0, L_pad - L))) if padded else x_flat
        pe_in = jnp.pad(pe_s.reshape(L), (0, L_pad - L)).reshape(1, L_pad)
        grid = (L_pad // TL, B_pad // TB)              # batch innermost -> pe tile resident
        x_spec = pl.BlockSpec((TB, TL), lambda s, b, *_: (b, s))
        pe_spec = pl.BlockSpec((1, TL), lambda s, b, *_: (0, s))
        out_shape = jax.ShapeDtypeStruct((B_pad, L_pad), dtype)
    out_spec = x_spec

    compiler_params = pltpu.CompilerParams(
        dimension_semantics=("parallel", "parallel"),  # v7x: shard grid across both TCs
        vmem_limit_bytes=vmem_limit,
    )
    # Alias x's buffer onto the output when it is a padded temporary (always safe) or the
    # caller explicitly donates x: avoids a separate output HBM allocation / XLA copy.
    alias_ok = padded or donate_x

    if p <= 0.0:
        # Eval / identity-dropout path: no seed prefetch, no PRNG — pure broadcast add.
        out = pl.pallas_call(
            _pe_add_kernel,
            out_shape=out_shape,
            grid_spec=pl.GridSpec(grid=grid, in_specs=[x_spec, pe_spec], out_specs=out_spec),
            compiler_params=compiler_params,
            input_output_aliases=({0: 0} if alias_ok else {}),
        )(x_in, pe_in)
    elif jax.default_backend() == "tpu":
        # In-kernel TPU PRNG dropout; seed lands in SMEM via scalar prefetch.
        seed_arr = jnp.asarray([seed], dtype=jnp.int32)
        out = pl.pallas_call(
            functools.partial(_pe_dropout_tpu_kernel, p=p),
            out_shape=out_shape,
            grid_spec=pltpu.PrefetchScalarGridSpec(
                num_scalar_prefetch=1,
                grid=grid,
                in_specs=[x_spec, pe_spec],
                out_specs=out_spec,
            ),
            compiler_params=compiler_params,
            input_output_aliases=({1: 0} if alias_ok else {}),  # index 0 is the seed scalar
        )(seed_arr, x_in, pe_in)
    else:
        # Fallback for backends without pltpu.prng_seed (e.g. CPU interpret mode) only;
        # uniforms are streamed in x.dtype so HBM traffic is not inflated if ever used on HW.
        if rng_key is None:
            rng_key = jax.random.PRNGKey(seed)
        u_dtype = dtype if jnp.issubdtype(dtype, jnp.floating) else jnp.float32
        u = jax.random.uniform(rng_key, x_in.shape, dtype=u_dtype)
        out = pl.pallas_call(
            functools.partial(_pe_dropout_mask_kernel, p=p),
            out_shape=out_shape,
            grid_spec=pl.GridSpec(grid=grid, in_specs=[x_spec, pe_spec, x_spec],
                                  out_specs=out_spec),
            compiler_params=compiler_params,
            input_output_aliases=({0: 0} if alias_ok else {}),
        )(x_in, pe_in, u)

    if flat:
        return out[:B, :S * D].reshape(B, S, D)
    return out[:B, :S, :]


if __name__ == "__main__":
    d_model = 8
    max_length = 10
    batch = 2
    seq_len = 8

    key = jax.random.PRNGKey(0)
    x = jax.random.normal(key, (batch, seq_len, d_model), dtype=jnp.float32)
    pe_table = make_positional_encoding_table(max_length, d_model)

    # Eval-mode (deterministic) path: must equal x + pe[:seq_len] exactly.
    out_eval = positional_encoding(x, pe_table, dropout_p=0.1, deterministic=True)
    out_eval = jax.block_until_ready(out_eval)
    ref = np.asarray(x) + np.asarray(pe_table)[None, :seq_len, :]
    assert out_eval.shape == (batch, seq_len, d_model)
    np.testing.assert_allclose(np.asarray(out_eval), ref, rtol=1e-6, atol=1e-6)

    # Training-mode path: dropout(p=0.1) with 1/(1-p) rescaling of survivors.
    out_train = positional_encoding(x, pe_table, dropout_p=0.1,
                                    deterministic=False, seed=1234)
    out_train = jax.block_until_ready(out_train)
    assert out_train.shape == (batch, seq_len, d_model)
    surv = np.asarray(out_train)
    kept = surv != 0.0                       # dropped elements are exactly zero
    np.testing.assert_allclose(surv[kept], (ref / (1.0 - 0.1))[kept], rtol=1e-5, atol=1e-5)

    print("KERNEL_OK")
</pallas_src>

<mosaic_0001>
module attributes {stable_mosaic.version = 11 : i64} {
  func.func @_pe_add_kernel(%arg0: i32, %arg1: i32, %arg2: memref<8x128xf32, #tpu.memory_space<vmem>>, %arg3: memref<1x128xf32, #tpu.memory_space<vmem>>, %arg4: memref<8x128xf32, #tpu.memory_space<vmem>>) attributes {dimension_semantics = [#tpu.dimension_semantics<parallel>, #tpu.dimension_semantics<parallel>], iteration_bounds = array<i64: 1, 1>, scalar_prefetch = 0 : i64, scratch_operands = 0 : i64, tpu.core_type = #tpu.core_type<tc>, window_params = [{transform_indices = @transform_0, window_bounds = array<i64: 8, 128>}, {transform_indices = @transform_1, window_bounds = array<i64: 1, 128>}, {transform_indices = @transform_2, window_bounds = array<i64: 8, 128>}]} {
    %c0 = arith.constant 0 : index
    %c0_0 = arith.constant 0 : index
    %0 = vector.load %arg2[%c0, %c0_0] : memref<8x128xf32, #tpu.memory_space<vmem>>, vector<8x128xf32>
    %c0_1 = arith.constant 0 : index
    %c0_2 = arith.constant 0 : index
    %1 = vector.load %arg3[%c0_1, %c0_2] : memref<1x128xf32, #tpu.memory_space<vmem>>, vector<1x128xf32>
    %2 = vector.broadcast %1 : vector<1x128xf32> to vector<8x128xf32>
    %3 = arith.addf %0, %2 : vector<8x128xf32>
    %c0_3 = arith.constant 0 : index
    %c0_4 = arith.constant 0 : index
    %4 = vector.load %arg4[%c0_3, %c0_4] : memref<8x128xf32, #tpu.memory_space<vmem>>, vector<8x128xf32>
    tpu.vector_store %arg4[%c0_3, %c0_4], %3 {strides = array<i32>} : memref<8x128xf32, #tpu.memory_space<vmem>>, vector<8x128xf32>,
    return
  }
  func.func @transform_0(%arg0: i32, %arg1: i32) -> (i32, i32) {
    %c0_i32 = arith.constant 0 : i32
    return %arg1, %arg0 : i32, i32
  }
  func.func @transform_1(%arg0: i32, %arg1: i32) -> (i32, i32) {
    %c0_i32 = arith.constant 0 : i32
    %c0_i32_0 = arith.constant 0 : i32
    return %c0_i32, %arg0 : i32, i32
  }
  func.func @transform_2(%arg0: i32, %arg1: i32) -> (i32, i32) {
    %c0_i32 = arith.constant 0 : i32
    return %arg1, %arg0 : i32, i32
  }
}

</mosaic_0001>

<bundles_post_ra>
// kernel: tpu_custom_call.1
= control target key start
LH: loop header
LB: loop body
LE: loop exit
PB: predicated region body
PF: predicated region fallthrough
CT: control target
= control target key end

     0   :  { %7 = vsyncpa [#allocation3], 0  ;;  %s122_s0 = inlined_call_operand.hbm [shape: f32[8,128], index: 0, kind: input, shape index: {}, may-alias: {0,2}]   ;;  %s123_s1 = inlined_call_operand.vmem [shape: f32[1,128], index: 1, kind: input, shape index: {}]   ;;  %s124_s2 = inlined_call_operand.hbm [shape: f32[8,128], index: 2, kind: output, shape index: {}, may-alias: {0,2}]  }
   0x1   :  { %8 = vsyncpa [#allocation4], 0  ;;  %s96_s9 = smov [#allocation2]  }
   0x2   :  { %s15_s10 = sshll.u32 %s96_s9, 4  ;;  %s16_s10 = int_to_ptr.vmem [resolvable:$true] %s15_s10 }
   0x3   :  { %s60_s11 = scalar_lea.vmem %s16_s10, 128  ;;  %p65_p1 = scmp.lt.s32.totalorder %s16_s10, %s16_s10 }
   0x4   :  { %p61_p0 = scmp.ne.s32.totalorder %s16_s10, %s60_s11  ;;  %p66_p2 = scmp.lt.s32.totalorder %s60_s11, %s60_s11 }
   0x6   :  { %p67_p3 = por %p66_p2, %p65_p1 }
   0x8   :  { %p68_p4 = pnand %p67_p3, %p61_p0 }
   0xa   :  { %71 = shalt.err (!%p68_p4)
}
   0xb   :  { %18 = dma.hbm_to_vmem [thread:$0]  %s122_s0, 128, %s16_s10, [#allocation3]  }
   0xc   :  { %92 = dma.done.wait [#allocation3], 128  }
   0xd   :  { %93 = vsyncadd [#allocation3], 4294967168  ;;  %s97_s14 = smov [#allocation5]   ;;  %v24_v0 = vld [vmem:[#allocation2] sm:$0xff] }
   0xe   :  { %s40_s15 = sshll.u32 %s97_s14, 4  ;;  %v49_v1 = vld [vmem:[%s123_s1] ss:$0 sm:$0xff]  ;;  %s41_s15 = int_to_ptr.vmem [resolvable:$true] %s40_s15 }
   0xf   :  { %v32_v2 = vadd.f32 %v49_v1, %v24_v0  ;;  %s72_s18 = scalar_lea.vmem %s41_s15, 128  ;;  %p77_p6 = scmp.lt.s32.totalorder %s41_s15, %s41_s15 }
  0x10   :  { %p73_p5 = scmp.ne.s32.totalorder %s41_s15, %s72_s18  ;;  %p78_p7 = scmp.lt.s32.totalorder %s72_s18, %s72_s18 }
  0x11   :  { %33 = vst [vmem:[#allocation5] sm:$0xff] %v32_v2 }
  0x12   :  { %p79_p8 = por %p78_p7, %p77_p6 }
  0x14   :  { %p80_p9 = pnand %p79_p8, %p73_p5 }
  0x16   :  { %83 = shalt.err (!%p80_p9)
}
  0x17   :  { %43 = dma.vmem_to_hbm [thread:$0]  %s41_s15, 128, %s124_s2, [#allocation4]  }
  0x18   :  { %94 = dma.done.wait [#allocation4], 128  }
  0x19   :  { %95 = vsyncadd [#allocation4], 4294967168 }
  0x1a   :  { %47 = vsyncpa [#allocation3], 1 }
  0x1b   :  { %48 = vsyncpa [#allocation4], 1 }

</bundles_post_ra>
